<compile_context>
chip_gen: v7x
topology: tpu7x:2x2x1
jax: 0.10.0
libtpu: 0.0.40
codegen_flags: <defaults>
</compile_context>

<pallas_src>
import jax
import jax.numpy as jnp
from jax.experimental import pallas as pl
from jax.experimental.pallas import tpu as pltpu


# ----------------------------- small helpers ------------------------------ #

def _cdiv(a, b):
    return -(-a // b)


def _round_up(x, m):
    return _cdiv(x, m) * m


def _sublane_multiple(dtype):
    # Native sublane tile: 8 rows for 32-bit, 16 for 16-bit, 32 for 8-bit.
    return max(8, 32 // max(1, jnp.dtype(dtype).itemsize))


def _max_identity(dtype):
    dtype = jnp.dtype(dtype)
    if dtype == jnp.bool_:
        return False
    if jnp.issubdtype(dtype, jnp.floating):
        # -inf exists for the standard float dtypes used here.
        # TODO(synk): fp8e4m3 has no inf encoding; would need finfo.min there.
        return float("-inf")
    if jnp.issubdtype(dtype, jnp.unsignedinteger):
        return 0
    return int(jnp.iinfo(dtype).min)


def _tpu_vmem_and_cores():
    """Best-effort (physical VMEM bytes per core, TensorCores per chip)."""
    vmem = None
    cores = 1
    try:
        info = pltpu.get_tpu_info()
        v = int(getattr(info, "vmem_capacity_bytes", 0) or 0)
        if v > 0:
            vmem = v
        for attr in ("num_cores", "tensorcores_per_chip", "cores_per_chip"):
            c = getattr(info, attr, None)
            if c:
                cores = int(c)
                break
    except Exception:
        pass
    try:
        kind = jax.devices()[0].device_kind.lower()
    except Exception:
        kind = ""
    if "v7" in kind:
        cores = max(cores, 2)
        if vmem is None:
            vmem = 64 * 1024 * 1024
    if vmem is None:
        # Conservative default, safe on every generation (v7x has 64 MiB).
        vmem = 64 * 1024 * 1024
    return vmem, cores


def _pick_batch_tile(B, tb_cap, sub, multicore):
    """Batch rows per grid step for the fast path.

    Keeps the (tb, C) output block sublane-dense (tb == B or tb % sub == 0).
    Only splits into >= 2 grid steps on chips with 2 TensorCores (v7x); on
    single-TC chips (v5e/v6e) fewer, larger steps win.
    Precondition: tb_cap >= min(B, sub).
    """
    if tb_cap >= B:
        tb = B
    else:
        tb = max(sub, (min(tb_cap, B) // sub) * sub)
    if multicore and B > sub:
        # ~half the batch per step (rounded up to a sublane tile) so both
        # TensorCores get roughly balanced work from the 'parallel' axis.
        half_up = _round_up(_cdiv(B, 2), sub)
        tb = max(sub, min(tb, half_up))
    return max(1, min(tb, B))


def _unfold(out, B, fold, C):
    # Finish the reduction over the points that were folded into lanes.
    if fold == 1:
        return out
    return jnp.max(jnp.reshape(out, (B, fold, C)), axis=1)


# -------------------------------- kernels --------------------------------- #

def _maxpool_kernel(x_ref, o_ref):
    # x_ref: (tb, N, C) block of batch rows; sublane max over the points axis.
    o_ref[...] = jnp.max(x_ref[...], axis=1)


def _make_ntiled_kernel(n_valid, tn, fill, needs_mask):
    def kernel(x_ref, o_ref):
        # x_ref: (tb, tn, C); running max over the N grid axis accumulated
        # directly in the resident output block (max is exact in any dtype).
        kn = pl.program_id(1)
        x = x_ref[...]
        if needs_mask:
            # Mask tail points past the true N in-kernel (the last N block is
            # padded with undefined data by the pipeline).  This replaces the
            # old jnp.pad, which cost a full extra HBM copy of the input.
            idx = kn * tn + jax.lax.broadcasted_iota(jnp.int32, x.shape, 1)
            x = jnp.where(idx < n_valid, x, jnp.asarray(fill, x.dtype))
        blk = jnp.max(x, axis=1)

        @pl.when(kn == 0)
        def _():
            o_ref[...] = blk

        @pl.when(kn > 0)
        def _():
            o_ref[...] = jnp.maximum(o_ref[...], blk)

    return kernel


# -------------------------------- wrapper ---------------------------------- #

def max_pool(input_data, num_channels, num_points, *,
             vmem_budget_bytes=None, force_kernel=False):
    """Pallas equivalent of MaxPool.forward.

    input_data: any array whose size is divisible by num_points * num_channels
                (matches torch's .view(-1, num_points, num_channels)).
    Returns array of shape (B, num_channels), B = size / (N * C).
    """
    x = jnp.reshape(input_data, (-1, num_points, num_channels))
    B, N, C = x.shape
    dtype = x.dtype
    itemsize = jnp.dtype(dtype).itemsize

    # Tiny inputs: launch + DMA setup dominates; fused XLA reduce wins.
    if not force_kernel and B * N * C * itemsize < (1 << 20):
        return jnp.max(x, axis=1)

    # Per-generation VMEM budget, actually communicated to Mosaic.
    vmem_physical, num_cores = _tpu_vmem_and_cores()
    if vmem_budget_bytes is None:
        # ~40 MiB of double-buffered tiles on v7x, ~80 MiB on v5e/v6e.
        vmem_budget_bytes = min((vmem_physical * 5) // 8, 80 * 1024 * 1024)
    budget = int(min(vmem_budget_bytes,
                     max(1 << 20, vmem_physical - (24 << 20))))
    vmem_limit = int(min(vmem_physical - (8 << 20), budget + (16 << 20)))
    multicore = num_cores >= 2

    # Lane folding: for narrow C fold k = 128 // C points into the lane axis
    # (free row-major reshape) so vregs / loads / stores are lane-dense and the
    # per-tile VMEM footprint shrinks by 128 / C.
    fold = 1
    if C < 128 and 128 % C == 0 and N % (128 // C) == 0:
        fold = 128 // C
    n_eff = N // fold
    c_eff = C * fold
    if fold > 1:
        x = jnp.reshape(x, (B, n_eff, c_eff))

    sub = _sublane_multiple(dtype)
    c_pad = _round_up(c_eff, 128)   # lane padding
    n_pad = _round_up(n_eff, sub)   # sublane padding

    cost = pl.CostEstimate(
        flops=B * N * C,
        transcendentals=0,
        bytes_accessed=(B * N * C + B * C) * itemsize,
    )

    # Sublane-rows of width c_pad available for double-buffered tiles.
    rows_avail = budget // (2 * c_pad * itemsize)

    # ---- Fast path: full N per block, tb batch rows per grid step. --------
    # "+1" row per batch element and "-sub" reserve the double-buffered output.
    tb_cap = max(0, rows_avail - sub) // (n_pad + 1)
    if tb_cap >= min(B, sub):
        tb = _pick_batch_tile(B, tb_cap, sub, multicore)
        out = pl.pallas_call(
            _maxpool_kernel,
            out_shape=jax.ShapeDtypeStruct((B, c_eff), dtype),
            grid=(_cdiv(B, tb),),
            in_specs=[pl.BlockSpec((tb, n_eff, c_eff), lambda b: (b, 0, 0))],
            out_specs=pl.BlockSpec((tb, c_eff), lambda b: (b, 0)),
            compiler_params=pltpu.CompilerParams(
                dimension_semantics=("parallel",),
                vmem_limit_bytes=vmem_limit),
            cost_estimate=cost,
        )(x)
        return _unfold(out, B, fold, C)

    # ---- Fallback: a full (tb, N, C) row set blows the budget; tile N with a
    # running-max accumulator resident in the output block. ------------------
    tb = B if B <= sub else sub

    def tn_cap_for(tb_):
        avail = rows_avail - _round_up(tb_, sub)        # minus output buffers
        return max(0, (avail // tb_) // sub * sub)

    tn = tn_cap_for(tb)
    if tn < sub and tb > 1:
        tb = 1
        tn = tn_cap_for(1)
    if tn < sub:
        # Pathologically wide C: even a (1, sub, c_pad) double-buffered tile
        # exceeds the budget.  Let XLA handle it rather than overflow VMEM.
        return _unfold(jnp.max(x, axis=1), B, fold, C)
    tn = min(tn, n_pad)

    needs_mask = (n_eff % tn) != 0
    kernel = _make_ntiled_kernel(n_eff, tn, _max_identity(dtype), needs_mask)
    out = pl.pallas_call(
        kernel,
        out_shape=jax.ShapeDtypeStruct((B, c_eff), dtype),
        grid=(_cdiv(B, tb), _cdiv(n_eff, tn)),          # reduction axis last
        in_specs=[pl.BlockSpec((tb, tn, c_eff), lambda b, kn: (b, kn, 0))],
        out_specs=pl.BlockSpec((tb, c_eff), lambda b, kn: (b, 0)),
        compiler_params=pltpu.CompilerParams(
            dimension_semantics=("parallel", "arbitrary"),
            vmem_limit_bytes=vmem_limit),
        cost_estimate=cost,
    )(x)
    return _unfold(out, B, fold, C)


if __name__ == "__main__":
    key = jax.random.PRNGKey(0)

    # Small shapes consistent with the module: batch=2, num_points=16, C=32.
    num_points, num_channels, batch = 16, 32, 2
    x = jax.random.normal(key, (batch, num_points, num_channels),
                          dtype=jnp.float32)
    # force_kernel=True so the tiny demo actually exercises the Pallas path.
    out = jax.block_until_ready(
        max_pool(x, num_channels, num_points, force_kernel=True))
    ref = jnp.max(x, axis=1)
    assert out.shape == (batch, num_channels)
    assert jnp.allclose(out, ref), "mismatch vs reference (batch-tiled path)"

    # Also exercise the N-tiled fallback (tiny forced budget) including the
    # in-kernel tail mask (20 effective points, tiles of 8).
    num_points2 = 80
    x2 = jax.random.normal(jax.random.PRNGKey(1),
                           (batch, num_points2, num_channels),
                           dtype=jnp.float32)
    out2 = jax.block_until_ready(
        max_pool(x2, num_channels, num_points2,
                 vmem_budget_bytes=32 * 1024, force_kernel=True))
    ref2 = jnp.max(x2, axis=1)
    assert out2.shape == (batch, num_channels)
    assert jnp.allclose(out2, ref2), "mismatch vs reference (N-tiled path)"

    print("KERNEL_OK")
</pallas_src>

<mosaic_0001>
module attributes {stable_mosaic.version = 11 : i64} {
  func.func @_maxpool_kernel(%arg0: i32, %arg1: memref<2x4x128xf32, #tpu.memory_space<vmem>>, %arg2: memref<2x128xf32, #tpu.memory_space<vmem>>) attributes {dimension_semantics = [#tpu.dimension_semantics<parallel>], iteration_bounds = array<i64: 1>, scalar_prefetch = 0 : i64, scratch_operands = 0 : i64, tpu.core_type = #tpu.core_type<tc>, window_params = [{transform_indices = @transform_0, window_bounds = array<i64: 2, 4, 128>}, {transform_indices = @transform_1, window_bounds = array<i64: 2, 128>}]} {
    %c0 = arith.constant 0 : index
    %c0_0 = arith.constant 0 : index
    %c0_1 = arith.constant 0 : index
    %0 = vector.load %arg1[%c0, %c0_0, %c0_1] : memref<2x4x128xf32, #tpu.memory_space<vmem>>, vector<2x4x128xf32>
    %cst = arith.constant dense<0xFF800000> : vector<2x128xf32>
    %1 = vector.multi_reduction <maximumf>, %0, %cst [1] : vector<2x4x128xf32> to vector<2x128xf32>
    %c0_2 = arith.constant 0 : index
    %c0_3 = arith.constant 0 : index
    %2 = vector.load %arg2[%c0_2, %c0_3] : memref<2x128xf32, #tpu.memory_space<vmem>>, vector<2x128xf32>
    tpu.vector_store %arg2[%c0_2, %c0_3], %1 {strides = array<i32>} : memref<2x128xf32, #tpu.memory_space<vmem>>, vector<2x128xf32>,
    return
  }
  func.func @transform_0(%arg0: i32) -> (i32, i32, i32) {
    %c0_i32 = arith.constant 0 : i32
    %c0_i32_0 = arith.constant 0 : i32
    %c0_i32_1 = arith.constant 0 : i32
    return %arg0, %c0_i32, %c0_i32_0 : i32, i32, i32
  }
  func.func @transform_1(%arg0: i32) -> (i32, i32) {
    %c0_i32 = arith.constant 0 : i32
    %c0_i32_0 = arith.constant 0 : i32
    return %arg0, %c0_i32 : i32, i32
  }
}

</mosaic_0001>

<bundles_post_ra>
// kernel: tpu_custom_call.1
= control target key start
LH: loop header
LB: loop body
LE: loop exit
PB: predicated region body
PF: predicated region fallthrough
CT: control target
= control target key end

     0   :  { %6 = vsyncpa [#allocation3], 0  ;;  %s151_s0 = inlined_call_operand.hbm [shape: f32[2,4,128], index: 0, kind: input, shape index: {}]   ;;  %s152_s1 = inlined_call_operand.hbm [shape: f32[2,128], index: 1, kind: output, shape index: {}]  }
   0x1   :  { %7 = vsyncpa [#allocation4], 0  ;;  %s113_s6 = smov [#allocation2]   ;;  %s65_s10 = scalar_lea.hbm %s151_s0, 128 }
   0x2   :  { %s13_s7 = sshll.u32 %s113_s6, 4  ;;  %p66_p0 = scmp.ne.s32.totalorder %s151_s0, %s65_s10  ;;  %s14_s7 = int_to_ptr.vmem [resolvable:$true] %s13_s7 }
   0x3   :  { %p69_p1 = scmp.lt.u32.totalorder %s65_s10, %s151_s0 }
   0x5   :  { %p71_p2 = pnand %p69_p1, %p66_p0 }
   0x7   :  { %74 = shalt.err (!%p71_p2)
}
   0x8   :  { %s75_s15 = scalar_lea.vmem %s14_s7, 128  ;;  %p80_p4 = scmp.lt.s32.totalorder %s14_s7, %s14_s7 }
   0x9   :  { %p76_p3 = scmp.ne.s32.totalorder %s14_s7, %s75_s15  ;;  %p81_p5 = scmp.lt.s32.totalorder %s75_s15, %s75_s15 }
   0xb   :  { %p82_p6 = por %p81_p5, %p80_p4 }
   0xd   :  { %p83_p7 = pnand %p82_p6, %p76_p3 }
   0xf   :  { %86 = shalt.err (!%p83_p7)
}
  0x10   :  { %s114_s16 = smov 64   ;;  %s115_s17 = smov 4  }
  0x11   :  { %19 = dma.hbm_to_vmem [thread:$0]  %s151_s0, 128, %s14_s7, [#allocation3], %s114_s16, %s114_s16, %s115_s17  }
  0x12   :  { %109 = dma.done.wait [#allocation3], 128  }
  0x13   :  { %110 = vsyncadd [#allocation3], 4294967168  ;;  %vm25_vm0 = vcmask 1043456   ;;  %v23_v0 = vld [vmem:[#allocation2] sm:$0xf]  ;;  %s116_s20 = smov [#allocation5]  }
  0x14   :  { %v24_v1 = vld [vmem:[#allocation2 + $0x4] sm:$0xf]  ;;  %v26_v2 = vsel %vm25_vm0, %v23_v0, -inf  ;;  %s52_s21 = sshll.u32 %s116_s20, 4  ;;  %vm42_vm1 = vcmask 1041409   ;;  %s53_s21 = int_to_ptr.vmem [resolvable:$true] %s52_s21 }
  0x15   :  { %v33_v3 = vsel %vm25_vm0, %v24_v1, -inf  ;;  %v27_v4 = vrot.slane %v26_v2, 4  ;;  %s87_s0 = scalar_lea.vmem %s53_s21, 32  ;;  %p92_p9 = scmp.lt.s32.totalorder %s53_s21, %s53_s21 }
  0x16   :  { %v34_v5 = vrot.slane %v33_v3, 4  ;;  %p88_p8 = scmp.ne.s32.totalorder %s53_s21, %s87_s0  ;;  %p93_p10 = scmp.lt.s32.totalorder %s87_s0, %s87_s0 }
  0x17   :  { %v28_v6 = vmax.f32 %v26_v2, %v27_v4 }
  0x18   :  { %v35_v7 = vmax.f32 %v33_v3, %v34_v5  ;;  %p94_p11 = por %p93_p10, %p92_p9 }
  0x19   :  { %v29_v8 = vrot.slane %v28_v6, 2 }
  0x1a   :  { %v36_v9 = vrot.slane %v35_v7, 2  ;;  %p95_p12 = pnand %p94_p11, %p88_p8 }
  0x1b   :  { %v30_v10 = vmax.f32 %v28_v6, %v29_v8 }
  0x1c   :  { %v37_v11 = vmax.f32 %v35_v7, %v36_v9 }
  0x1d   :  { %v31_v12 = vrot.slane %v30_v10, 1 }
  0x1e   :  { %v38_v13 = vrot.slane %v37_v11, 1 }
  0x1f   :  { %v32_v14 = vmax.f32 %v30_v10, %v31_v12 }
  0x20   :  { %v39_v15 = vmax.f32 %v37_v11, %v38_v13 }
  0x22   :  { %v43_v16 = vsel %vm42_vm1, %v39_v15, %v32_v14 }
  0x23   :  { %45 = vst [vmem:[#allocation5] sm:$0x3] %v43_v16 }
  0x24   :  { %98 = shalt.err (!%p95_p12)
}
  0x25   :  { %s99_s24 = scalar_lea.hbm %s152_s1, 32 }
  0x26   :  { %p100_p13 = scmp.ne.s32.totalorder %s152_s1, %s99_s24  ;;  %p103_p0 = scmp.lt.u32.totalorder %s99_s24, %s152_s1 }
  0x28   :  { %p105_p1 = pnand %p103_p0, %p100_p13 }
  0x2a   :  { %108 = shalt.err (!%p105_p1)
}
  0x2b   :  { %55 = dma.vmem_to_hbm [thread:$0]  %s53_s21, 32, %s152_s1, [#allocation4]  }
  0x2c   :  { %111 = dma.done.wait [#allocation4], 32  }
  0x2d   :  { %112 = vsyncadd [#allocation4], 4294967264 }
  0x2e   :  { %59 = vsyncpa [#allocation3], 1 }
  0x2f   :  { %60 = vsyncpa [#allocation4], 1 }

</bundles_post_ra>
